<compile_context>
chip_gen: v7x
topology: tpu7x:2x2x1
jax: 0.10.0
libtpu: 0.0.40
codegen_flags: <defaults>
</compile_context>

<pallas_src>
import jax
import jax.numpy as jnp
from jax.experimental import pallas as pl
from jax.experimental.pallas import tpu as pltpu


def _round_up(x, m):
    return (x + m - 1) // m * m


# ---------------------------------------------------------------------------
# Kernel 1: stem patch matmul  (M-tiled, bf16 operands, f32 accumulation)
# ---------------------------------------------------------------------------
def stem_matmul_kernel(p_ref, w_ref, b_ref, o_ref):
    o_ref[...] = (
        jnp.dot(p_ref[...], w_ref[...], preferred_element_type=jnp.float32)
        + b_ref[...]
    )


def stem_features(x, conv_w, conv_b, *, k=4, stride=4):
    """Returns features as (N, Ho*Wo, Cpad) float32 (channels on lanes)."""
    n, cin, h, w = x.shape
    cout = conv_w.shape[0]
    ho, wo = h // stride, w // stride
    m = n * ho * wo
    kk = cin * k * k
    kp = _round_up(kk, 128)        # lane-dense K
    cp = _round_up(cout, 128)      # lane-dense Cout

    # im2col for non-overlapping k x k / stride-k patches (ordered Cin, kh, kw)
    patches = x.reshape(n, cin, ho, k, wo, k)
    patches = patches.transpose(0, 2, 4, 1, 3, 5).reshape(m, kk)

    # M tile: 512 rows for large problems, otherwise round the whole M up to
    # a sublane multiple so a single block covers it.
    tm = 512 if m >= 512 else _round_up(m, 8)
    mp = _round_up(m, tm)

    patches = jnp.pad(patches, ((0, mp - m), (0, kp - kk))).astype(jnp.bfloat16)
    w2 = jnp.pad(conv_w.reshape(cout, kk).T,
                 ((0, kp - kk), (0, cp - cout))).astype(jnp.bfloat16)
    b2 = jnp.pad(conv_b, (0, cp - cout)).reshape(1, cp).astype(jnp.float32)

    out = pl.pallas_call(
        stem_matmul_kernel,
        grid=(mp // tm,),
        in_specs=[
            pl.BlockSpec((tm, kp), lambda i: (i, 0)),
            pl.BlockSpec((kp, cp), lambda i: (0, 0)),
            pl.BlockSpec((1, cp), lambda i: (0, 0)),
        ],
        out_specs=pl.BlockSpec((tm, cp), lambda i: (i, 0)),
        out_shape=jax.ShapeDtypeStruct((mp, cp), jnp.float32),
        compiler_params=pltpu.CompilerParams(
            dimension_semantics=("parallel",)),
    )(patches, w2, b2)

    feat_nhwc = out[:m].reshape(n, ho * wo, cp)   # (N, HW, Cpad)
    return feat_nhwc, (ho, wo, cout)


# ---------------------------------------------------------------------------
# Kernel 2: fused Local_Branch head.
#   sigmoid(features) * argmax_c(mask_pooled) -> global avg pool -> Linear
#   Layout: (B_TILE, HW, Cpad) per grid step, channels on the lane axis.
# ---------------------------------------------------------------------------
def head_kernel(feat_ref, mask_ref, w_ref, b_ref, out_ref, pool_ref):
    feat = feat_ref[...]                                  # (bt, HW, Cp) f32
    # sigmoid via tanh: stable for large |x|, routed to the EUP slot.
    sig = 0.5 * (jnp.tanh(0.5 * feat) + 1.0)

    m = mask_ref[...]                                     # (bt, HW, Cm)
    cm = m.shape[-1]
    mmax = jnp.max(m, axis=-1, keepdims=True)
    lane_idx = jax.lax.broadcasted_iota(jnp.float32, m.shape, 2)
    # first-max tie-break (matches torch / jnp argmax)
    idx = jnp.min(jnp.where(m == mmax, lane_idx, jnp.float32(cm)),
                  axis=-1, keepdims=True)                 # (bt, HW, 1)

    weight_x = sig * idx                                  # broadcast over Cp lanes
    pooled = jnp.mean(weight_x, axis=1)                   # (bt, Cp): adaptive_avg_pool2d (1,1)
    pool_ref[...] = pooled

    # classifier: lane-dense MXU dot (bt, Cp) @ (Cp, Npad)
    out_ref[...] = (
        jnp.dot(pooled, w_ref[...], preferred_element_type=jnp.float32)
        + b_ref[...]
    )


def local_branch_head(feat_nhwc, mask_pooled, fc_w, fc_b):
    n, hw, cp = feat_nhwc.shape
    c, ncls = fc_w.shape
    npad = _round_up(ncls, 128)
    cm = mask_pooled.shape[1]

    # mask to (N, HW, Cm): channels on lanes for the vectorized argmax
    mask_flat = mask_pooled.reshape(n, cm, hw).transpose(0, 2, 1)

    # zero-pad classifier so padded feature channels contribute nothing
    w_pad = jnp.pad(fc_w, ((0, cp - c), (0, npad - ncls))).astype(jnp.float32)
    b_pad = jnp.pad(fc_b, (0, npad - ncls)).reshape(1, npad).astype(jnp.float32)

    bt = n if n <= 8 else 8          # batch tile per grid step
    assert n % bt == 0

    out, pool = pl.pallas_call(
        head_kernel,
        grid=(n // bt,),
        in_specs=[
            pl.BlockSpec((bt, hw, cp), lambda i: (i, 0, 0)),
            pl.BlockSpec((bt, hw, cm), lambda i: (i, 0, 0)),
            pl.BlockSpec((cp, npad), lambda i: (0, 0)),
            pl.BlockSpec((1, npad), lambda i: (0, 0)),
        ],
        out_specs=[
            pl.BlockSpec((bt, npad), lambda i: (i, 0)),
            pl.BlockSpec((bt, cp), lambda i: (i, 0)),
        ],
        out_shape=[
            jax.ShapeDtypeStruct((n, npad), jnp.float32),
            jax.ShapeDtypeStruct((n, cp), jnp.float32),
        ],
        compiler_params=pltpu.CompilerParams(
            dimension_semantics=("parallel",)),
    )(feat_nhwc, mask_flat, w_pad, b_pad)

    return out[:, :ncls], pool[:, :c]


# ---------------------------------------------------------------------------
# Full forward pass (mirrors Local_Branch.forward)
# ---------------------------------------------------------------------------
def local_branch_forward(x, mask, params):
    feat_nhwc, (ho, wo, cout) = stem_features(
        x, params["conv_w"], params["conv_b"])            # (N, HW, Cpad)

    # F.adaptive_avg_pool2d(mask, (7,7)) — assumes mask H, W divisible by 7
    n, cm, mh, mw = mask.shape
    mask_pooled = mask.reshape(n, cm, ho, mh // ho, wo, mw // wo).mean(axis=(3, 5))

    out, out_after_pooling = local_branch_head(
        feat_nhwc, mask_pooled, params["fc_w"], params["fc_b"])

    # Return `features` in NCHW to match the PyTorch module's signature.
    features = (feat_nhwc[:, :, :cout]
                .reshape(n, ho, wo, cout)
                .transpose(0, 3, 1, 2))
    return out, features, out_after_pooling


def init_params(key, *, cin=3, cfeat=32, k=4, num_classes=5):
    k1, k2, k3, k4 = jax.random.split(key, 4)
    return dict(
        conv_w=0.1 * jax.random.normal(k1, (cfeat, cin, k, k), jnp.float32),
        conv_b=0.1 * jax.random.normal(k2, (cfeat,), jnp.float32),
        # nn.Linear weight is (out,in); stored transposed here: (in,out)
        fc_w=0.1 * jax.random.normal(k3, (cfeat, num_classes), jnp.float32),
        fc_b=0.1 * jax.random.normal(k4, (num_classes,), jnp.float32),
    )


# ---------------------------------------------------------------------------
# Pure-JAX reference (same bf16-operand / f32-accumulate conv) for checking
# ---------------------------------------------------------------------------
def reference_forward(x, mask, params):
    n = x.shape[0]
    feat = jax.lax.conv_general_dilated(
        x.astype(jnp.bfloat16), params["conv_w"].astype(jnp.bfloat16),
        window_strides=(4, 4), padding="VALID",
        dimension_numbers=("NCHW", "OIHW", "NCHW"),
        preferred_element_type=jnp.float32,
    ) + params["conv_b"][None, :, None, None]
    sig = jax.nn.sigmoid(feat)
    cm, mh, mw = mask.shape[1], mask.shape[2], mask.shape[3]
    mp = mask.reshape(n, cm, 7, mh // 7, 7, mw // 7).mean(axis=(3, 5))
    idx = jnp.argmax(mp, axis=1)[:, None, :, :].astype(jnp.float32)
    wx = sig * idx
    pooled = wx.mean(axis=(2, 3))
    out = pooled @ params["fc_w"] + params["fc_b"]
    return out, feat, pooled


if __name__ == "__main__":
    key = jax.random.PRNGKey(0)
    kx, km, kp = jax.random.split(key, 3)
    x = jax.random.normal(kx, (2, 3, 28, 28), jnp.float32)      # NCHW image
    mask = jax.random.uniform(km, (2, 4, 14, 14), jnp.float32)  # NCHW mask (4 classes)
    params = init_params(kp)

    out, features, out_after_pooling = local_branch_forward(x, mask, params)
    jax.block_until_ready((out, features, out_after_pooling))

    ro, rf, rp = reference_forward(x, mask, params)
    assert jnp.allclose(features, rf, atol=2e-3, rtol=2e-3)
    assert jnp.allclose(out_after_pooling, rp, atol=2e-3, rtol=2e-3)
    assert jnp.allclose(out, ro, atol=2e-3, rtol=2e-3)

    print("KERNEL_OK")
</pallas_src>

<mosaic_0001>
module attributes {stable_mosaic.version = 11 : i64} {
  func.func @stem_matmul_kernel(%arg0: i32, %arg1: memref<104x128xbf16, #tpu.memory_space<vmem>>, %arg2: memref<128x128xbf16, #tpu.memory_space<vmem>>, %arg3: memref<1x128xf32, #tpu.memory_space<vmem>>, %arg4: memref<104x128xf32, #tpu.memory_space<vmem>>) attributes {dimension_semantics = [#tpu.dimension_semantics<parallel>], iteration_bounds = array<i64: 1>, scalar_prefetch = 0 : i64, scratch_operands = 0 : i64, tpu.core_type = #tpu.core_type<tc>, window_params = [{transform_indices = @transform_0, window_bounds = array<i64: 104, 128>}, {pipeline_mode = #tpu.pipeline_mode<synchronous>, transform_indices = @transform_1, window_bounds = array<i64: 128, 128>}, {pipeline_mode = #tpu.pipeline_mode<synchronous>, transform_indices = @transform_2, window_bounds = array<i64: 1, 128>}, {transform_indices = @transform_3, window_bounds = array<i64: 104, 128>}]} {
    %c0 = arith.constant 0 : index
    %c0_0 = arith.constant 0 : index
    %0 = vector.load %arg1[%c0, %c0_0] : memref<104x128xbf16, #tpu.memory_space<vmem>>, vector<104x128xbf16>
    %c0_1 = arith.constant 0 : index
    %c0_2 = arith.constant 0 : index
    %1 = vector.load %arg2[%c0_1, %c0_2] : memref<128x128xbf16, #tpu.memory_space<vmem>>, vector<128x128xbf16>
    %cst = arith.constant dense<0.000000e+00> : vector<104x128xf32>
    %2 = tpu.matmul %0, %1, %cst {dimension_numbers = #tpu.dot_dimension_numbers<[1], [0], [0], [1], [0, 0, 1, 1], [], []>} : vector<104x128xbf16>, vector<128x128xbf16>, vector<104x128xf32> -> vector<104x128xf32>
    %c0_3 = arith.constant 0 : index
    %c0_4 = arith.constant 0 : index
    %3 = vector.load %arg3[%c0_3, %c0_4] : memref<1x128xf32, #tpu.memory_space<vmem>>, vector<1x128xf32>
    %4 = vector.broadcast %3 : vector<1x128xf32> to vector<104x128xf32>
    %5 = arith.addf %2, %4 : vector<104x128xf32>
    %c0_5 = arith.constant 0 : index
    %c0_6 = arith.constant 0 : index
    %6 = vector.load %arg4[%c0_5, %c0_6] : memref<104x128xf32, #tpu.memory_space<vmem>>, vector<104x128xf32>
    tpu.vector_store %arg4[%c0_5, %c0_6], %5 {strides = array<i32>} : memref<104x128xf32, #tpu.memory_space<vmem>>, vector<104x128xf32>,
    return
  }
  func.func @transform_0(%arg0: i32) -> (i32, i32) {
    %c0_i32 = arith.constant 0 : i32
    %c0_i32_0 = arith.constant 0 : i32
    return %arg0, %c0_i32 : i32, i32
  }
  func.func @transform_1(%arg0: i32) -> (i32, i32) {
    %c0_i32 = arith.constant 0 : i32
    %c0_i32_0 = arith.constant 0 : i32
    %c0_i32_1 = arith.constant 0 : i32
    return %c0_i32, %c0_i32_0 : i32, i32
  }
  func.func @transform_2(%arg0: i32) -> (i32, i32) {
    %c0_i32 = arith.constant 0 : i32
    %c0_i32_0 = arith.constant 0 : i32
    %c0_i32_1 = arith.constant 0 : i32
    return %c0_i32, %c0_i32_0 : i32, i32
  }
  func.func @transform_3(%arg0: i32) -> (i32, i32) {
    %c0_i32 = arith.constant 0 : i32
    %c0_i32_0 = arith.constant 0 : i32
    return %arg0, %c0_i32 : i32, i32
  }
}

</mosaic_0001>

<bundles_post_ra>
// kernel: tpu_custom_call.1
= control target key start
LH: loop header
LB: loop body
LE: loop exit
PB: predicated region body
PF: predicated region fallthrough
CT: control target
= control target key end

     0   :  { %8 = vsyncpa [#allocation3], 0  ;;  %s549_s0 = inlined_call_operand.hbm [shape: bf16[104,128], index: 0, kind: input, shape index: {}]   ;;  %s550_s1 = inlined_call_operand.hbm [shape: bf16[128,128], index: 1, kind: input, shape index: {}]   ;;  %s551_s2 = inlined_call_operand.vmem [shape: f32[1,128], index: 2, kind: input, shape index: {}]   ;;  %s552_s3 = inlined_call_operand.hbm [shape: f32[104,128], index: 3, kind: output, shape index: {}]  }
   0x1   :  { %9 = vsyncpa [#allocation6], 0 }
   0x2   :  { %10 = vsyncpa [#allocation4], 0  ;;  %s474_s12 = smov [#allocation2]   ;;  %s402_s16 = scalar_lea.hbm %s549_s0, 832 }
   0x3   :  { %s16_s13 = sshll.u32 %s474_s12, 4  ;;  %p403_p0 = scmp.ne.s32.totalorder %s549_s0, %s402_s16  ;;  %s17_s13 = int_to_ptr.vmem [resolvable:$true] %s16_s13 }
   0x4   :  { %p406_p1 = scmp.lt.u32.totalorder %s402_s16, %s549_s0 }
   0x6   :  { %p408_p2 = pnand %p406_p1, %p403_p0 }
   0x8   :  { %411 = shalt.err (!%p408_p2)
}
   0x9   :  { %s412_s21 = scalar_lea.vmem %s17_s13, 832  ;;  %p417_p4 = scmp.lt.s32.totalorder %s17_s13, %s17_s13 }
   0xa   :  { %p413_p3 = scmp.ne.s32.totalorder %s17_s13, %s412_s21  ;;  %p418_p5 = scmp.lt.s32.totalorder %s412_s21, %s412_s21 }
   0xc   :  { %p419_p6 = por %p418_p5, %p417_p4 }
   0xe   :  { %p420_p7 = pnand %p419_p6, %p413_p3 }
  0x10   :  { %423 = shalt.err (!%p420_p7)
}
  0x11   :  { %s475_s22 = smov 64   ;;  %s476_s23 = smov 4  }
  0x12   :  { %22 = dma.hbm_to_vmem [thread:$0]  %s549_s0, 832, %s17_s13, [#allocation3], %s475_s22, %s475_s22, %s476_s23  }
  0x13   :  { %s477_s26 = smov [#allocation5]   ;;  %s424_s30 = scalar_lea.hbm %s550_s1, 1024 }
  0x14   :  { %s28_s27 = sshll.u32 %s477_s26, 4  ;;  %p425_p8 = scmp.ne.s32.totalorder %s550_s1, %s424_s30  ;;  %s29_s27 = int_to_ptr.vmem [resolvable:$true] %s28_s27 }
  0x15   :  { %p428_p9 = scmp.lt.u32.totalorder %s424_s30, %s550_s1 }
  0x17   :  { %p430_p10 = pnand %p428_p9, %p425_p8 }
  0x19   :  { %433 = shalt.err (!%p430_p10)
}
  0x1a   :  { %s434_s8 = scalar_lea.vmem %s29_s27, 1024  ;;  %p439_p12 = scmp.lt.s32.totalorder %s29_s27, %s29_s27 }
  0x1b   :  { %p435_p11 = scmp.ne.s32.totalorder %s29_s27, %s434_s8  ;;  %p440_p13 = scmp.lt.s32.totalorder %s434_s8, %s434_s8 }
  0x1d   :  { %p441_p0 = por %p440_p13, %p439_p12 }
  0x1f   :  { %p442_p1 = pnand %p441_p0, %p435_p11 }
  0x21   :  { %445 = shalt.err (!%p442_p1)
}
  0x22   :  { %34 = dma.hbm_to_vmem [thread:$0]  %s550_s1, 1024, %s29_s27, [#allocation6], %s475_s22, %s475_s22, %s476_s23  }
  0x23   :  { %468 = dma.done.wait [#allocation3], 832  }
  0x24   :  { %469 = vsyncadd [#allocation3], 4294966464 }
  0x25   :  { %470 = dma.done.wait [#allocation6], 1024  }
  0x26   :  { %471 = vsyncadd [#allocation6], 4294966272  ;;  %v478_v0 = vmov 0.0   ;;  %vm479_vm0 = vmmov 0   ;;  %v387_v1 = vld [vmem:[#allocation5] sm:$0xff]   ;;  %v388_v2 = vld [vmem:[#allocation5 + $0x8] sm:$0xff]  }
  0x27   :  { %318 = vmatprep.subr.bf16.mxu0 %v478_v0  ;;  %362 = vmatprep.subr.bf16.mxu1 %v478_v0  ;;  %v389_v3 = vld [vmem:[#allocation5 + $0x10] sm:$0xff]   ;;  %v390_v4 = vld [vmem:[#allocation5 + $0x18] sm:$0xff]   ;;  %v391_v5 = vld [vmem:[#allocation5 + $0x20] sm:$0xff]  }
  0x28   :  { %334 = vmatprep.mubr.msk.bf16.mxu0 %vm479_vm0, %v478_v0  ;;  %350 = vmatprep.mubr.msk.bf16.mxu1 %vm479_vm0, %v478_v0  ;;  %v392_v6 = vld [vmem:[#allocation5 + $0x28] sm:$0xff]   ;;  %v393_v7 = vld [vmem:[#allocation5 + $0x30] sm:$0xff]   ;;  %v394_v8 = vld [vmem:[#allocation5 + $0x38] sm:$0xff]  }
  0x29   :  { %319 = vmatpush3.bf16.msra.mxu0 %v387_v1  ;;  %370 = vmatpush3.bf16.msra.mxu1 %v387_v1  ;;  %v395_v9 = vld [vmem:[#allocation2] sm:$0xff]   ;;  %v397_v11 = vld [vmem:[#allocation2 + $0x8] sm:$0xff]   ;;  %v399_v13 = vld [vmem:[#allocation2 + $0x10] sm:$0xff]  }
  0x2a   :  { %320 = vmatprep.subr.bf16.mxu0 %v478_v0  ;;  %363 = vmatprep.subr.bf16.mxu1 %v478_v0  ;;  %v396_v10 = vld [vmem:[#allocation2 + $0x20] sm:$0xff]   ;;  %v398_v12 = vld [vmem:[#allocation2 + $0x28] sm:$0xff]   ;;  %v400_v14 = vld [vmem:[#allocation2 + $0x30] ss:$0 sps:$4 sm:$0xff]  }
  0x2b   :  { %v401_v15 = vld [vmem:[#allocation2 + $0x18] sm:$0xff]   ;;  %v287_v16 = vld [vmem:[%s551_s2] ss:$0 sm:$0xff]  ;;  %s480_s2 = smov [#allocation7]  }
  0x2c   :  { %s274_s11 = sshll.u32 %s480_s2, 4  ;;  %s275_s11 = int_to_ptr.vmem [resolvable:$true] %s274_s11 }
  0x2d   :  { %321 = vmatpush3.bf16.msra.mxu0 %v388_v2  ;;  %371 = vmatpush3.bf16.msra.mxu1 %v388_v2  ;;  %s446_s12 = scalar_lea.vmem %s275_s11, 1664  ;;  %p451_p3 = scmp.lt.s32.totalorder %s275_s11, %s275_s11 }
  0x2e   :  { %322 = vmatprep.subr.bf16.mxu0 %v478_v0  ;;  %364 = vmatprep.subr.bf16.mxu1 %v478_v0  ;;  %p447_p2 = scmp.ne.s32.totalorder %s275_s11, %s446_s12  ;;  %p452_p4 = scmp.lt.s32.totalorder %s446_s12, %s446_s12 }
  0x30   :  { %p453_p5 = por %p452_p4, %p451_p3 }
  0x31   :  { %323 = vmatpush3.bf16.msra.mxu0 %v389_v3  ;;  %372 = vmatpush3.bf16.msra.mxu1 %v389_v3 }
  0x32   :  { %324 = vmatprep.subr.bf16.mxu0 %v478_v0  ;;  %365 = vmatprep.subr.bf16.mxu1 %v478_v0  ;;  %p454_p6 = pnand %p453_p5, %p447_p2 }
  0x35   :  { %325 = vmatpush3.bf16.msra.mxu0 %v390_v4  ;;  %373 = vmatpush3.bf16.msra.mxu1 %v390_v4 }
  0x36   :  { %326 = vmatprep.subr.bf16.mxu0 %v478_v0  ;;  %366 = vmatprep.subr.bf16.mxu1 %v478_v0 }
  0x39   :  { %327 = vmatpush3.bf16.msra.mxu0 %v391_v5  ;;  %374 = vmatpush3.bf16.msra.mxu1 %v391_v5 }
  0x3a   :  { %328 = vmatprep.subr.bf16.mxu0 %v478_v0  ;;  %367 = vmatprep.subr.bf16.mxu1 %v478_v0 }
  0x3d   :  { %329 = vmatpush3.bf16.msra.mxu0 %v392_v6  ;;  %375 = vmatpush3.bf16.msra.mxu1 %v392_v6 }
  0x3e   :  { %330 = vmatprep.subr.bf16.mxu0 %v478_v0  ;;  %368 = vmatprep.subr.bf16.mxu1 %v478_v0 }
  0x41   :  { %331 = vmatpush3.bf16.msra.mxu0 %v393_v7  ;;  %376 = vmatpush3.bf16.msra.mxu1 %v393_v7 }
  0x42   :  { %332 = vmatprep.subr.bf16.mxu0 %v478_v0  ;;  %369 = vmatprep.subr.bf16.mxu1 %v478_v0 }
  0x45   :  { %333 = vmatpush3.bf16.msra.mxu0 %v394_v8  ;;  %377 = vmatpush3.bf16.msra.mxu1 %v394_v8 }
  0x48   :  { %335 = vmatmul.mubr.bf16.vlgmr.msra.gmra.mrb[0].mxu0 %v395_v9  ;;  %351 = vmatmul.mubr.bf16.vlgmr.msra.gmra.mrb[0].mxu1 %v396_v10 }
  0x49   :  { %338 = vmatprep.mubr.msk.bf16.mxu0 %vm479_vm0, %v478_v0  ;;  %354 = vmatprep.mubr.msk.bf16.mxu1 %vm479_vm0, %v478_v0 }
  0x50   :  { %339 = vmatmul.mubr.bf16.gmra.mrb[4].mxu0 %v397_v11  ;;  %355 = vmatmul.mubr.bf16.gmra.mrb[4].mxu1 %v398_v12 }
  0x51   :  { %342 = vmatprep.mubr.msk.bf16.mxu0 %vm479_vm0, %v478_v0  ;;  %358 = vmatprep.mubr.msk.bf16.mxu1 %vm479_vm0, %v478_v0 }
  0x58   :  { %343 = vmatmul.mubr.bf16.gmra.mrb[8].mxu0 %v399_v13  ;;  %359 = vmatmul.mubr.bf16.gmra.mrb[8].mxu1 %v400_v14 }
  0x59   :  { %346 = vmatprep.mubr.msk.bf16.mxu0 %vm479_vm0, %v478_v0 }
  0x60   :  { %347 = vmatmul.mubr.bf16.gmra.mrb[12].mxu0 %v401_v15 }
 0x11b   :  { %v202_v17 = vpop.f32.mrb[0].mxu0  ;;  %v234_v18 = vpop.f32.mrb[0].mxu1 }
 0x11c   :  { %v203_v19 = vadd.f32 %v287_v16, %v202_v17  ;;  %v336_v20 = vpop.f32.mrb[1].mxu0  ;;  %v235_v21 = vadd.f32 %v287_v16, %v234_v18  ;;  %v352_v22 = vpop.f32.mrb[1].mxu1 }
 0x11d   :  { %v205_v23 = vpop.f32.mrb[2].mxu0  ;;  %v237_v24 = vpop.f32.mrb[2].mxu1 }
 0x11e   :  { %256 = vst [vmem:[#allocation7] sm:$0xff] %v203_v19  ;;  %v206_v25 = vadd.f32 %v287_v16, %v205_v23  ;;  %v337_v26 = vpop.f32.mrb[3].mxu0  ;;  %264 = vst [vmem:[#allocation7 + $0x40] sm:$0xff] %v235_v21  ;;  %v238_v27 = vadd.f32 %v287_v16, %v237_v24  ;;  %v353_v28 = vpop.f32.mrb[3].mxu1 }
 0x120   :  { %257 = vst [vmem:[#allocation7 + $0x8] sm:$0xff] %v206_v25  ;;  %265 = vst [vmem:[#allocation7 + $0x48] sm:$0xff] %v238_v27 }
 0x123   :  { %v210_v29 = vpop.f32.mrb[4].mxu0  ;;  %v242_v30 = vpop.f32.mrb[4].mxu1 }
 0x124   :  { %v211_v31 = vadd.f32 %v287_v16, %v210_v29  ;;  %v340_v32 = vpop.f32.mrb[5].mxu0  ;;  %v243_v33 = vadd.f32 %v287_v16, %v242_v30  ;;  %v356_v34 = vpop.f32.mrb[5].mxu1 }
 0x125   :  { %v213_v35 = vpop.f32.mrb[6].mxu0  ;;  %v245_v36 = vpop.f32.mrb[6].mxu1 }
 0x126   :  { %258 = vst [vmem:[#allocation7 + $0x10] sm:$0xff] %v211_v31  ;;  %v214_v37 = vadd.f32 %v287_v16, %v213_v35  ;;  %v341_v38 = vpop.f32.mrb[7].mxu0  ;;  %266 = vst [vmem:[#allocation7 + $0x50] sm:$0xff] %v243_v33  ;;  %v246_v39 = vadd.f32 %v287_v16, %v245_v36  ;;  %v357_v40 = vpop.f32.mrb[7].mxu1 }
 0x128   :  { %259 = vst [vmem:[#allocation7 + $0x18] sm:$0xff] %v214_v37  ;;  %267 = vst [vmem:[#allocation7 + $0x58] sm:$0xff] %v246_v39 }
 0x12b   :  { %v218_v41 = vpop.f32.mrb[8].mxu0  ;;  %v250_v42 = vpop.f32.mrb[8].mxu1 }
 0x12c   :  { %v219_v43 = vadd.f32 %v287_v16, %v218_v41  ;;  %v344_v44 = vpop.f32.mrb[9].mxu0  ;;  %v251_v45 = vadd.f32 %v287_v16, %v250_v42  ;;  %v360_v46 = vpop.f32.mrb[9].mxu1 }
 0x12d   :  { %v221_v47 = vpop.f32.mrb[10].mxu0  ;;  %v253_v48 = vpop.f32.mrb[10].mxu1 }
 0x12e   :  { %260 = vst [vmem:[#allocation7 + $0x20] sm:$0xff] %v219_v43  ;;  %v222_v49 = vadd.f32 %v287_v16, %v221_v47  ;;  %v345_v50 = vpop.f32.mrb[11].mxu0  ;;  %268 = vst [vmem:[#allocation7 + $0x60] sm:$0xff] %v251_v45  ;;  %v361_v51 = vpop.f32.mrb[11].mxu1 }
 0x130   :  { %261 = vst [vmem:[#allocation7 + $0x28] sm:$0xff] %v222_v49 }
 0x133   :  { %v226_v52 = vpop.f32.mrb[12].mxu0 }
 0x134   :  { %v227_v53 = vadd.f32 %v287_v16, %v226_v52  ;;  %v348_v54 = vpop.f32.mrb[13].mxu0 }
 0x135   :  { %v229_v55 = vpop.f32.mrb[14].mxu0 }
 0x136   :  { %262 = vst [vmem:[#allocation7 + $0x30] sm:$0xff] %v227_v53  ;;  %v230_v56 = vadd.f32 %v287_v16, %v229_v55  ;;  %v349_v57 = vpop.f32.mrb[15].mxu0 }
 0x138   :  { %263 = vst [vmem:[#allocation7 + $0x38] sm:$0xff] %v230_v56 }
 0x139   :  { %457 = shalt.err (!%p454_p6)
}
 0x13a   :  { %s458_s15 = scalar_lea.hbm %s552_s3, 1664 }
 0x13b   :  { %p459_p7 = scmp.ne.s32.totalorder %s552_s3, %s458_s15  ;;  %p462_p8 = scmp.lt.u32.totalorder %s458_s15, %s552_s3 }
 0x13d   :  { %p464_p9 = pnand %p462_p8, %p459_p7 }
 0x13f   :  { %467 = shalt.err (!%p464_p9)
}
 0x140   :  { %s481_s20 = smov 128   ;;  %s482_s21 = smov 8  }
 0x141   :  { %280 = dma.vmem_to_hbm [thread:$0]  %s275_s11, 1664, %s552_s3, [#allocation4], %s481_s20, %s481_s20, %s482_s21  }
 0x142   :  { %472 = dma.done.wait [#allocation4], 1664  }
 0x143   :  { %473 = vsyncadd [#allocation4], 4294965632 }
 0x144   :  { %284 = vsyncpa [#allocation3], 1 }
 0x145   :  { %285 = vsyncpa [#allocation6], 1 }
 0x146   :  { %286 = vsyncpa [#allocation4], 1 }

</bundles_post_ra>
